<compile_context>
chip_gen: v5e
topology: v5e:2x2
jax: 0.10.0
libtpu: 0.0.40
codegen_flags: <defaults>
</compile_context>

<pallas_src>
import jax
import jax.numpy as jnp
from jax.experimental import pallas as pl
from jax.experimental.pallas import tpu as pltpu

_LANE = 128


def _cdiv(a, b):
    return -(-a // b)


def _vmem_budget(user_budget=None):
    """Per-kernel working-set budget derived from physical VMEM."""
    if user_budget is not None:
        return int(user_budget)
    try:
        cap = int(pltpu.get_tpu_info().vmem_capacity_bytes)
    except Exception:
        cap = 64 * 1024 * 1024  # conservative fallback: v7x per-TC physical VMEM
    # Use at most half of physical VMEM for this kernel's tiles (48 MiB cap).
    return max(8 * 1024 * 1024, min(cap // 2, 48 * 1024 * 1024))


# ---------------------------------------------------------------------------
# Fused kernels: Residual(1x1 pointwise conv)  ==>  out = W @ x + b + x
# x block: (b_blk, C, T) with the spatial axis T on lanes (lane-dense).
# Weight (C, C) and bias (C, 1) are grid-resident (constant block index).
# ---------------------------------------------------------------------------
def _fused_residual_mxu_kernel(x_ref, w_ref, b_ref, o_ref):
    w = w_ref[...]                                      # (C, C), same dtype as x
    bias = b_ref[...].astype(jnp.float32)               # (C, 1) lane-broadcast
    for i in range(x_ref.shape[0]):                     # static unroll over batch block
        x = x_ref[i]                                     # (C, T)
        y = jnp.dot(w, x, preferred_element_type=jnp.float32)
        o_ref[i] = (y + bias + x.astype(jnp.float32)).astype(o_ref.dtype)


def _fused_residual_vpu_kernel(x_ref, w_ref, b_ref, o_ref):
    # Tiny C: a (C,C)x(C,T) matmul uses <0.1% of a 256-wide MXU.  Do the 1x1
    # conv as an unrolled VPU broadcast-FMA over input channels instead.
    w = w_ref[...].astype(jnp.float32)                   # (C_out, C_in)
    bias = b_ref[...].astype(jnp.float32)                # (C, 1)
    c_in = w.shape[1]
    for bi in range(x_ref.shape[0]):                     # static unroll over batch block
        x = x_ref[bi].astype(jnp.float32)                 # (C, T)
        acc = w[:, 0:1] * x[0:1, :]
        for i in range(1, c_in):
            acc = acc + w[:, i:i + 1] * x[i:i + 1, :]
        o_ref[bi] = (acc + bias + x).astype(o_ref.dtype)


def residual_pointwise(x_nchw, w, b, *, max_vmem_bytes=None):
    """Residual(1x1-conv)(x): conv1x1(x; w, b) + x, fused in one Pallas kernel.

    x_nchw: (B, C, H, W)   w: (C_out=C, C_in=C)   b: (C,) or (C, 1)
    """
    B, C, H, W = x_nchw.shape
    HW = H * W

    # Matching native-dtype MXU operands (tiny one-off host cast of the weight);
    # bias keeps its own dtype — it is cast to f32 only inside the kernel.
    if w.dtype != x_nchw.dtype:
        w = w.astype(x_nchw.dtype)
    b = jnp.reshape(b, (C, 1))

    # (B, C, H*W): pure reshape (view), no transpose / extra HBM pass.
    x3 = x_nchw.reshape(B, C, HW)

    x_isz = jnp.dtype(x_nchw.dtype).itemsize
    w_isz = jnp.dtype(w.dtype).itemsize
    budget = _vmem_budget(max_vmem_bytes)

    def footprint(b_blk, t_hw):
        io = 4 * b_blk * C * t_hw * x_isz        # double-buffered x-in + out tiles
        f32 = 2 * b_blk * C * t_hw * 4           # f32 matmul result + epilogue temp
        wgt = 2 * C * C * w_isz + 2 * C * 4      # resident weight + bias
        return io + f32 + wgt

    # Largest power-of-two lane tile (<= 2048) that fits the VMEM budget.
    hw_ceil = _cdiv(HW, _LANE) * _LANE
    t_hw = next(c for c in (2048, 1024, 512, 256, 128) if c <= hw_ceil)
    while t_hw > _LANE and footprint(1, t_hw) > budget:
        t_hw //= 2
    steps_hw = _cdiv(HW, t_hw)

    # Guarantee >= 4 total grid steps when possible (v7x megacore / pipelining).
    while _cdiv(B, 1) * steps_hw < 4 and t_hw > _LANE:
        t_hw //= 2
        steps_hw = _cdiv(HW, t_hw)

    # Small-HW layers: block several images per grid step to amortise the
    # ~0.35 us/step overhead, but keep >= 4 batch-grid steps.
    b_blk = 1
    if steps_hw <= 2:
        while (b_blk * 2 <= min(B, 8)
               and _cdiv(B, b_blk * 2) * steps_hw >= 4
               and footprint(b_blk * 2, t_hw) <= budget):
            b_blk *= 2

    # If the whole spatial extent fits in one tile, use a full-extent block
    # (any size allowed) so no lanes are masked at all.
    if t_hw >= HW:
        t_hw = HW
        steps_hw = 1

    kernel = _fused_residual_vpu_kernel if C <= 8 else _fused_residual_mxu_kernel
    vmem_limit = int(budget + (8 << 20))  # budget + headroom for Mosaic internals

    out3 = pl.pallas_call(
        kernel,
        out_shape=jax.ShapeDtypeStruct((B, C, HW), x_nchw.dtype),
        grid_spec=pltpu.PrefetchScalarGridSpec(
            num_scalar_prefetch=0,
            grid=(_cdiv(B, b_blk), steps_hw),
            in_specs=[
                pl.BlockSpec((b_blk, C, t_hw), lambda bi, j: (bi, 0, j)),
                pl.BlockSpec((C, C), lambda bi, j: (0, 0)),
                pl.BlockSpec((C, 1), lambda bi, j: (0, 0)),
            ],
            out_specs=pl.BlockSpec((b_blk, C, t_hw), lambda bi, j: (bi, 0, j)),
        ),
        compiler_params=pltpu.CompilerParams(
            dimension_semantics=("parallel", "parallel"),
            vmem_limit_bytes=vmem_limit),
    )(x3, w, b)

    return out3.reshape(B, C, H, W)


# ---------------------------------------------------------------------------
# Generic wrapper: Residual(fn)(x) == fn(x) + x for arbitrary fn.
# fn runs in plain JAX (it is arbitrary, just like the PyTorch module's
# self.fn); the residual add — the only compute owned by Residual itself —
# runs as a tiled, lane-dense Pallas add that writes over fn(x)'s buffer.
# ---------------------------------------------------------------------------
def _residual_add_kernel(y_ref, x_ref, o_ref):
    o_ref[...] = y_ref[...] + x_ref[...]


def residual(fn, x, *args, **kwargs):
    # TODO(synk): arbitrary `fn` has no generic Pallas lowering; it runs in JAX.
    y = fn(x, *args, **kwargs)
    assert y.shape == x.shape and y.dtype == x.dtype

    total = x.size
    itemsize = jnp.dtype(x.dtype).itemsize
    budget = _vmem_budget(None)

    # Pick a lane width that exactly divides the flat size: zero host copies.
    lane = next((c for c in (2048, 1024, 512, 256, 128) if total % c == 0), None)
    if lane is None:
        # Ragged total with no 128-multiple divisor: a host-side pad + slice
        # would add full extra HBM passes around a bandwidth-bound add, so let
        # XLA fuse the residual add into fn's epilogue instead.
        # TODO(synk): no copy-free Pallas tiling for ragged flat sizes.
        return y + x

    R = total // lane
    x2 = x.reshape(R, lane)
    y2 = y.reshape(R, lane)

    # Row tile: multiple of 8 (or full extent), sized to the VMEM budget,
    # keeping >= 4 grid steps when possible.
    if R <= 8:
        tr = R
    else:
        tr = 8
        while (tr * 2 <= 1024 and tr * 2 <= R
               and 6 * (tr * 2) * lane * itemsize <= budget):
            tr *= 2
        while tr > 8 and _cdiv(R, tr) < 4:
            tr //= 2

    out2 = pl.pallas_call(
        _residual_add_kernel,
        out_shape=jax.ShapeDtypeStruct((R, lane), x.dtype),
        grid_spec=pltpu.PrefetchScalarGridSpec(
            num_scalar_prefetch=0,
            grid=(_cdiv(R, tr),),
            in_specs=[
                pl.BlockSpec((tr, lane), lambda i: (i, 0)),
                pl.BlockSpec((tr, lane), lambda i: (i, 0)),
            ],
            out_specs=pl.BlockSpec((tr, lane), lambda i: (i, 0)),
        ),
        compiler_params=pltpu.CompilerParams(
            dimension_semantics=("parallel",),
            vmem_limit_bytes=int(budget + (8 << 20))),
        input_output_aliases={0: 0},   # write the result over fn(x)'s buffer
    )(y2, x2)

    return out2.reshape(x.shape)


if __name__ == "__main__":
    key = jax.random.PRNGKey(0)
    keys = jax.random.split(key, 12)

    # --- fused path, tiny C (VPU kernel), 128-lane tiles, 4 grid steps -----
    B, C, H, W = 2, 4, 16, 16
    x = jax.random.normal(keys[0], (B, C, H, W), dtype=jnp.float32)
    w = 0.1 * jax.random.normal(keys[1], (C, C), dtype=jnp.float32)
    b = 0.1 * jax.random.normal(keys[2], (C,), dtype=jnp.float32)
    out = jax.block_until_ready(residual_pointwise(x, w, b))
    ref = jnp.einsum("oi,bihw->bohw", w, x) + b[None, :, None, None] + x
    assert out.shape == x.shape and out.dtype == x.dtype
    assert jnp.allclose(out, ref, atol=2e-2, rtol=2e-2)

    # --- fused path, MXU kernel, HW < 128 (full-extent lane block) ---------
    B2, C2, H2, W2 = 1, 16, 8, 8
    x_b = jax.random.normal(keys[3], (B2, C2, H2, W2), dtype=jnp.float32)
    w_b = 0.1 * jax.random.normal(keys[4], (C2, C2), dtype=jnp.float32)
    b_b = 0.1 * jax.random.normal(keys[5], (C2,), dtype=jnp.float32)
    out_b = jax.block_until_ready(residual_pointwise(x_b, w_b, b_b))
    ref_b = jnp.einsum("oi,bihw->bohw", w_b, x_b) + b_b[None, :, None, None] + x_b
    assert jnp.allclose(out_b, ref_b, atol=2e-2, rtol=2e-2)

    # --- fused path, small-HW layer with batch blocking (b_blk > 1) --------
    B3, C3, H3, W3 = 16, 8, 8, 8
    x_c = jax.random.normal(keys[6], (B3, C3, H3, W3), dtype=jnp.float32)
    w_c = 0.1 * jax.random.normal(keys[7], (C3, C3), dtype=jnp.float32)
    b_c = 0.1 * jax.random.normal(keys[8], (C3,), dtype=jnp.float32)
    out_c = jax.block_until_ready(residual_pointwise(x_c, w_c, b_c))
    ref_c = jnp.einsum("oi,bihw->bohw", w_c, x_c) + b_c[None, :, None, None] + x_c
    assert jnp.allclose(out_c, ref_c, atol=2e-2, rtol=2e-2)

    # --- fused path, ragged HW=144: masked partial lane tile, no host pads -
    B4, C4, H4, W4 = 2, 16, 12, 12
    x_d = jax.random.normal(keys[9], (B4, C4, H4, W4), dtype=jnp.float32)
    w_d = 0.1 * jax.random.normal(keys[10], (C4, C4), dtype=jnp.float32)
    b_d = 0.1 * jax.random.normal(keys[11], (C4,), dtype=jnp.float32)
    out_d = jax.block_until_ready(residual_pointwise(x_d, w_d, b_d))
    ref_d = jnp.einsum("oi,bihw->bohw", w_d, x_d) + b_d[None, :, None, None] + x_d
    assert jnp.allclose(out_d, ref_d, atol=2e-2, rtol=2e-2)

    # --- generic path: Residual(arbitrary fn), tiled + aliased residual add
    out_g = jax.block_until_ready(residual(jax.nn.gelu, x))
    assert jnp.allclose(out_g, jax.nn.gelu(x) + x, atol=1e-5, rtol=1e-5)

    print("KERNEL_OK")
</pallas_src>

<mosaic_0001>
module attributes {stable_mosaic.version = 11 : i64} {
  func.func @_fused_residual_vpu_kernel(%arg0: i32, %arg1: i32, %arg2: memref<1x4x128xf32, #tpu.memory_space<vmem>>, %arg3: memref<4x4xf32, #tpu.memory_space<vmem>>, %arg4: memref<4x1xf32, #tpu.memory_space<vmem>>, %arg5: memref<1x4x128xf32, #tpu.memory_space<vmem>>) attributes {dimension_semantics = [#tpu.dimension_semantics<parallel>, #tpu.dimension_semantics<parallel>], iteration_bounds = array<i64: 2, 2>, scalar_prefetch = 0 : i64, scratch_operands = 0 : i64, tpu.core_type = #tpu.core_type<tc>, window_params = [{transform_indices = @transform_0, window_bounds = array<i64: 1, 4, 128>}, {pipeline_mode = #tpu.pipeline_mode<synchronous>, transform_indices = @transform_1, window_bounds = array<i64: 4, 4>}, {pipeline_mode = #tpu.pipeline_mode<synchronous>, transform_indices = @transform_2, window_bounds = array<i64: 4, 1>}, {transform_indices = @transform_3, window_bounds = array<i64: 1, 4, 128>}]} {
    %c0 = arith.constant 0 : index
    %c0_0 = arith.constant 0 : index
    %0 = vector.load %arg3[%c0, %c0_0] : memref<4x4xf32, #tpu.memory_space<vmem>>, vector<4x4xf32>
    %c0_1 = arith.constant 0 : index
    %c0_2 = arith.constant 0 : index
    %1 = vector.load %arg4[%c0_1, %c0_2] : memref<4x1xf32, #tpu.memory_space<vmem>>, vector<4x1xf32>
    %c0_3 = arith.constant 0 : index
    %c0_4 = arith.constant 0 : index
    %c0_5 = arith.constant 0 : index
    %2 = vector.load %arg2[%c0_3, %c0_4, %c0_5] : memref<1x4x128xf32, #tpu.memory_space<vmem>>, vector<1x4x128xf32>
    %3 = vector.shape_cast %2 : vector<1x4x128xf32> to vector<4x128xf32>
    %4 = vector.extract_strided_slice %0 {offsets = [0, 0], sizes = [4, 1], strides = [1, 1]} : vector<4x4xf32> to vector<4x1xf32>
    %5 = vector.extract_strided_slice %3 {offsets = [0, 0], sizes = [1, 128], strides = [1, 1]} : vector<4x128xf32> to vector<1x128xf32>
    %6 = vector.broadcast %4 : vector<4x1xf32> to vector<4x128xf32>
    %7 = vector.broadcast %5 : vector<1x128xf32> to vector<4x128xf32>
    %8 = arith.mulf %6, %7 : vector<4x128xf32>
    %9 = vector.extract_strided_slice %0 {offsets = [0, 1], sizes = [4, 1], strides = [1, 1]} : vector<4x4xf32> to vector<4x1xf32>
    %10 = vector.extract_strided_slice %3 {offsets = [1, 0], sizes = [1, 128], strides = [1, 1]} : vector<4x128xf32> to vector<1x128xf32>
    %11 = vector.broadcast %9 : vector<4x1xf32> to vector<4x128xf32>
    %12 = vector.broadcast %10 : vector<1x128xf32> to vector<4x128xf32>
    %13 = arith.mulf %11, %12 : vector<4x128xf32>
    %14 = arith.addf %8, %13 : vector<4x128xf32>
    %15 = vector.extract_strided_slice %0 {offsets = [0, 2], sizes = [4, 1], strides = [1, 1]} : vector<4x4xf32> to vector<4x1xf32>
    %16 = vector.extract_strided_slice %3 {offsets = [2, 0], sizes = [1, 128], strides = [1, 1]} : vector<4x128xf32> to vector<1x128xf32>
    %17 = vector.broadcast %15 : vector<4x1xf32> to vector<4x128xf32>
    %18 = vector.broadcast %16 : vector<1x128xf32> to vector<4x128xf32>
    %19 = arith.mulf %17, %18 : vector<4x128xf32>
    %20 = arith.addf %14, %19 : vector<4x128xf32>
    %21 = vector.extract_strided_slice %0 {offsets = [0, 3], sizes = [4, 1], strides = [1, 1]} : vector<4x4xf32> to vector<4x1xf32>
    %22 = vector.extract_strided_slice %3 {offsets = [3, 0], sizes = [1, 128], strides = [1, 1]} : vector<4x128xf32> to vector<1x128xf32>
    %23 = vector.broadcast %21 : vector<4x1xf32> to vector<4x128xf32>
    %24 = vector.broadcast %22 : vector<1x128xf32> to vector<4x128xf32>
    %25 = arith.mulf %23, %24 : vector<4x128xf32>
    %26 = arith.addf %20, %25 : vector<4x128xf32>
    %27 = vector.broadcast %1 : vector<4x1xf32> to vector<4x128xf32>
    %28 = arith.addf %26, %27 : vector<4x128xf32>
    %29 = arith.addf %28, %3 : vector<4x128xf32>
    %c0_6 = arith.constant 0 : index
    %c0_7 = arith.constant 0 : index
    %c0_8 = arith.constant 0 : index
    %30 = vector.load %arg5[%c0_6, %c0_7, %c0_8] : memref<1x4x128xf32, #tpu.memory_space<vmem>>, vector<1x4x128xf32>
    %31 = vector.shape_cast %30 : vector<1x4x128xf32> to vector<4x128xf32>
    %32 = vector.shape_cast %29 : vector<4x128xf32> to vector<1x4x128xf32>
    tpu.vector_store %arg5[%c0_6, %c0_7, %c0_8], %32 {strides = array<i32>} : memref<1x4x128xf32, #tpu.memory_space<vmem>>, vector<1x4x128xf32>,
    return
  }
  func.func @transform_0(%arg0: i32, %arg1: i32) -> (i32, i32, i32) {
    %c0_i32 = arith.constant 0 : i32
    %c0_i32_0 = arith.constant 0 : i32
    return %arg0, %c0_i32, %arg1 : i32, i32, i32
  }
  func.func @transform_1(%arg0: i32, %arg1: i32) -> (i32, i32) {
    %c0_i32 = arith.constant 0 : i32
    %c0_i32_0 = arith.constant 0 : i32
    %c0_i32_1 = arith.constant 0 : i32
    return %c0_i32, %c0_i32_0 : i32, i32
  }
  func.func @transform_2(%arg0: i32, %arg1: i32) -> (i32, i32) {
    %c0_i32 = arith.constant 0 : i32
    %c0_i32_0 = arith.constant 0 : i32
    %c0_i32_1 = arith.constant 0 : i32
    return %c0_i32, %c0_i32_0 : i32, i32
  }
  func.func @transform_3(%arg0: i32, %arg1: i32) -> (i32, i32, i32) {
    %c0_i32 = arith.constant 0 : i32
    %c0_i32_0 = arith.constant 0 : i32
    return %arg0, %c0_i32, %arg1 : i32, i32, i32
  }
}

</mosaic_0001>

<bundles_post_ra>
// kernel: tpu_custom_call.1
= control target key start
LH: loop header
LB: loop body
LE: loop exit
PB: predicated region body
PF: predicated region fallthrough
CT: control target
= control target key end

     0   :  { %8 = vsyncpa [#allocation3], 0  ;;  %s757_s0 = inlined_call_operand.hbm [shape: f32[2,4,256], index: 0, kind: input, shape index: {}]   ;;  %s758_s1 = inlined_call_operand.vmem [shape: f32[4,4], index: 1, kind: input, shape index: {}]   ;;  %s759_s2 = inlined_call_operand.vmem [shape: f32[4,1], index: 2, kind: input, shape index: {}]   ;;  %s760_s3 = inlined_call_operand.hbm [shape: f32[2,4,256], index: 3, kind: output, shape index: {}]  }
   0x1   :  { %10 = vsyncpa [#allocation3 + $0x1], 0 }
   0x2   :  { %11 = vsyncpa [#allocation4], 0 }
   0x3   :  { %13 = vsyncpa [#allocation4 + $0x1], 0  ;;  %s605_s12 = smov 0   ;;  %s607_s13 = smov 0  }
   0x4   :  { %s609_s14 = smov 0   ;;  %s611_s15 = smov 0  }
   0x5   :  { %s613_s16 = smov 0   ;;  %s615_s17 = smov 0  }
   0x6   :  { %s617_s18 = smov 0   ;;  %s619_s19 = smov 0  }
   0x7 LB: > { %s348_s20 = sadd.s32 4294967295, %s579_s19   ;;  %s349_s21 = sadd.s32 4294967294, %s579_s19   ;;  %s579_s19 = sphi %s619_s19, %s19_s19   ;;  %s575_s18 = sphi %s617_s18, %s774_s18   ;;  %s571_s17 = sphi %s615_s17, %s773_s17   ;;  %s567_s16 = sphi %s613_s16, %s772_s16   ;;  %s563_s15 = sphi %s611_s15, %s771_s15   ;;  %s559_s14 = sphi %s609_s14, %s770_s14   ;;  %s555_s13 = sphi %s607_s13, %s769_s13   ;;  %s551_s12 = sphi %s605_s12, %s768_s12  }
   0x8   : > { %s28_s22 = sadd.s32 1, %s571_s17  ;;  %s31_s23 = sadd.s32 1, %s575_s18 }
   0x9   : > { %p29_p0 = scmp.ge.s32.totalorder %s28_s22, 2  ;;  %s40_s24 = sadd.s32 1, %s559_s14 }
   0xa   : > { %p47_p1 = scmp.ne.s32.totalorder %s559_s14, %s555_s13  ;;  %p48_p2 = scmp.eq.s32.totalorder %s579_s19, 0 }
   0xb   : > { %s776_s22 = smov (%p29_p0, %s28_s22), 0  ;;  %s778_s23 = smov (!%p29_p0, %s31_s23), %s575_s18 }
   0xc   : > { %s36_s25 = ssub.s32 %s571_s17, %s776_s22  ;;  %p658_p3 = por %p48_p2, %p47_p1 }
   0xd   : > { %p33_p4 = scmp.ge.s32.totalorder %s778_s23, 2  ;;  %p53_p5 = scmp.ne.s32.totalorder %s555_s13, %s551_s12 }
   0xe   : > { %p54_p6 = scmp.eq.s32.totalorder %s348_s20, 0  ;;  %p121_p7 = scmp.eq.s32.totalorder %s348_s20, 3 }
   0xf   : > { %s780_s23 = smov (%p33_p4, %s778_s23), 0  ;;  %p127_p10 = scmp.eq.s32.totalorder %s349_s21, 3 }
  0x10   : > { %763 = sst [smem:[#allocation8_spill]] %s780_s23  ;;  %p666_p8 = por %p54_p6, %p53_p5 }
  0x11   : > { %p670_p9 = por %p121_p7, %p47_p1  ;;  %s35_s29 = ssub.s32 %s575_s18, %s780_s23 }
  0x12   : > { %s37_s30 = sor.u32 %s36_s25, %s35_s29  ;;  %p676_p12 = por %p127_p10, %p53_p5 }
  0x13   : > { %p38_p11 = scmp.eq.s32.totalorder %s37_s30, 0  ;;  %p375_p13 = scmp.lt.s32.totalorder %s579_s19, 4 }
  0x14   : > { %s153_s5 = sand.u32 1, %s559_s14   ;;  %s353_s8 = sshll.u32 %s575_s18, 1 }
  0x15   : > { %s683_s6 = scalar_select %p38_p11, %s559_s14, %s40_s24  }
  0x16   : > { %s352_s7 = sshll.u32 %s153_s5, 2  ;;  %s161_s9 = sadd.s32 %s571_s17, %s353_s8 }
  0x17   : > { %s157_s10 = scalar_lea.vmem [#allocation2], %s352_s7  ;;  %s354_s20 = sshll.u32 %s161_s9, 2 }
  0x18   : > { %s167_s11 = sshll.u32 %s157_s10, 4  ;;  %s163_s29 = scalar_lea.hbm %s757_s0, %s354_s20  ;;  %s168_s11 = int_to_ptr.vmem [resolvable:$true] %s167_s11 }
  0x19   : > { %p368_p0 = pnand %p375_p13, %p658_p3  ;;  %s165_s30 = sshll.u32 %s163_s29, 4  ;;  %s166_s30 = int_to_ptr.hbm [resolvable:$true] %s165_s30 }
  0x1a   : > { %p355_p1 = scmp.ge.s32.totalorder %s579_s19, 1  ;;  %s154_s23 = scalar_lea.sflag [#allocation3], %s153_s5 }
  0x1b   : > { %370 = dma.hbm_to_vmem [thread:$0]  (!%p368_p0), %s166_s30, 64, %s168_s11, %s154_s23  }
  0x1c   : > { %p172_p2 = scmp.lt.s32.totalorder %s579_s19, 5 }
  0x1e   : > { %p173_p4 = pnand %p355_p1, %p172_p2 }
  0x1f   : > { %s695_s24 = sand.u32 (!%p173_p4), 1, %s555_s13  }
  0x20   : > { %176 = sbr.rel (%p173_p4) target bundleno = 179 (0xb3), region = 32  ;;  %s356_s7 = sshll.u32 (!%p173_p4), %s695_s24, 2 }
  0x21   : > { %s179_s8 = scalar_lea.sflag (!%p173_p4), [#allocation3], %s695_s24  ;;  %s182_s26 = scalar_lea.vmem (!%p173_p4), [#allocation2], %s356_s7 }
  0x25   : > { %542 = dma.done.wait (%p666_p8), %s179_s8, 64  }
  0x26   : > { %544 = vsyncadd (%p666_p8), %s179_s8, 4294967232  ;;  %v581_v0 = vmov 0   ;;  %v582_v1 = vmov 2   ;;  %v206_v2 = vld [vmem:[%s758_s1] sm:$0xf]  ;;  %v583_v4 = vmov 1  }
  0x27   : > { %445 = vset.pattern.permute.xlu0 %v581_v0  ;;  %447 = vset.pattern.permute.xlu1 %v582_v1  ;;  %v207_v3 = vld [vmem:[%s759_s2] sm:$0xf]  ;;  %v584_v5 = vmov 3   ;;  %s359_s27 = sshll.u32 %s567_s16, 1  ;;  %s205_s29 = scalar_lea.vmem [#allocation5], %s356_s7 }
  0x28   : > { %449 = vset.pattern.permute.xlu2 %v581_v0  ;;  %211 = vperm.xlu0 %445, %v206_v2   ;;  %v208_v8 = vld [vmem:[%s182_s26] sm:$0xf]  ;;  %s256_s11 = sadd.s32 %s563_s15, %s359_s27  ;;  %s260_s15 = sshll.u32 %s205_s29, 4  ;;  %s261_s15 = int_to_ptr.vmem [resolvable:$true] %s260_s15 }
  0x29   : > { %224 = vperm.xlu1 %447, %v206_v2   ;;  %239 = vperm.xlu2 %449, %v207_v3   ;;  %v214_v9 = vperm.slane %v208_v8, 0  ;;  %v220_v10 = vperm.slane %v208_v8, 1  ;;  %v227_v11 = vperm.slane %v208_v8, 2  ;;  %v234_v12 = vperm.slane %v208_v8, 3  ;;  %s360_s20 = sshll.u32 %s256_s11, 2  ;;  %s246_s8 = scalar_lea.sflag [#allocation4], %s695_s24 }
  0x2a   : > { %s258_s16 = scalar_lea.hbm %s760_s3, %s360_s20  ;;  %s501_s10 = scalar_lea.hbm %s760_s3, 16 }
  0x2b   : > { %s262_s30 = sshll.u32 %s258_s16, 4  ;;  %s263_s30 = int_to_ptr.hbm [resolvable:$true] %s262_s30 }
  0x2c   : > { %s495_s26 = sshra.s32 %s263_s30, 4  ;;  %s496_s26 = int_to_ptr.hbm [resolvable:$true] %s495_s26 }
  0x2d   : > { %s497_s23 = scalar_lea.hbm %s496_s26, 4  ;;  %p502_p7 = scmp.lt.s32.totalorder %s496_s26, %s760_s3 }
  0x2e   : > { %p498_p3 = scmp.ne.s32.totalorder %s496_s26, %s497_s23  ;;  %p503_p8 = scmp.lt.s32.totalorder %s501_s10, %s497_s23 }
  0x30   : > { %446 = vset.pattern.permute.xlu0 %v583_v4  ;;  %p499_p5 = pnand %p498_p3, %p670_p9  ;;  %p504_p10 = por %p503_p8, %p502_p7 }
  0x31   : > { %448 = vset.pattern.permute.xlu1 %v584_v5  ;;  %217 = vperm.xlu0 %446, %v206_v2  }
  0x32   : > { %231 = vperm.xlu1 %448, %v206_v2   ;;  %p500_p6 = pneg %p499_p5 }
  0x34   : > { %p505_p11 = pnand %p504_p10, %p500_p6 }
  0x39   : > { %450 = vset.pattern.permute.xlu0 %v581_v0 }
  0x83   : > { %v240_v21 = vpop.permute.xlu2 %239 }
  0x9a   : > { %v212_v6 = vpop.permute.xlu0 %211 }
  0x9b   : > { %v225_v7 = vpop.permute.xlu1 %224  ;;  %v215_v15 = vmul.f32 %v214_v9, %v212_v6 }
  0x9c   : > { %v228_v17 = vmul.f32 %v227_v11, %v225_v7 }
  0xa3   : > { %v218_v13 = vpop.permute.xlu0 %217 }
  0xa4   : > { %v232_v14 = vpop.permute.xlu1 %231  ;;  %v221_v16 = vmul.f32 %v220_v10, %v218_v13 }
  0xa5   : > { %v235_v19 = vmul.f32 %v234_v12, %v232_v14 }
  0xa6   : > { %v222_v18 = vadd.f32 %v221_v16, %v215_v15 }
  0xa8   : > { %v229_v20 = vadd.f32 %v228_v17, %v222_v18 }
  0xaa   : > { %v236_v22 = vadd.f32 %v235_v19, %v229_v20 }
  0xac   : > { %v242_v23 = vadd.f32 %v240_v21, %v236_v22 }
  0xae   : > { %v243_v24 = vadd.f32 %v242_v23, %v208_v8 }
  0xb0   : > { %244 = vst [vmem:[%s205_s29] sm:$0xf] %v243_v24 }
  0xb1   : > { %508 = shalt.err (!%p505_p11)
}
  0xb2   : > { %365 = dma.vmem_to_hbm [thread:$0]  (%p670_p9), %s261_s15, 64, %s263_s30, %s246_s8  }
  0xb3 PF: > { %p376_p13 = scmp.ge.s32.totalorder %s579_s19, 2  ;;  %s274_s24 = sand.u32 1, %s551_s12  }
  0xb4   : > { %s275_s11 = scalar_lea.sflag [#allocation4], %s274_s24 }
  0xb5   : > { %p372_p0 = pnand %p376_p13, %p676_p12 }
  0xb7   : > { %p373_p1 = pneg %p372_p0 }
  0xb9   : > { %546 = dma.done.wait (%p373_p1), %s275_s11, 64  }
  0xba   : > { %548 = vsyncadd (%p373_p1), %s275_s11, 4294967232  ;;  %s19_s19 = sadd.s32 1, %s579_s19   ;;  %s767_s28 = sld [smem:[#allocation8_spill]] }
  0xbb   : > { %p16_p2 = scmp.ge.s32.totalorder %s19_s19, 6   ;;  %s768_s12 = smov %s555_s13 }
  0xbc   : > { %s769_s13 = smov %s559_s14  ;;  %s770_s14 = smov %s683_s6 }
  0xbd   : > { %s771_s15 = smov %s571_s17  ;;  %s772_s16 = smov %s575_s18 }
  0xbe   : > { %s773_s17 = smov %s776_s22  ;;  %18 = sbr.rel (!%p16_p2) target bundleno = 7 (0x7), region = 77 }
  0xc0   : > { %s774_s18 = smov %s767_s28 }
  0xc3   :  { %281 = vsyncpa [#allocation3], 1 }
  0xc4   :  { %283 = vsyncpa [#allocation3 + $0x1], 1 }
  0xc5   :  { %284 = vsyncpa [#allocation4], 1 }
  0xc6   :  { %286 = vsyncpa [#allocation4 + $0x1], 1 }

</bundles_post_ra>
